<compile_context>
chip_gen: v5e
topology: v5e:2x2
jax: 0.10.0
libtpu: 0.0.40
codegen_flags: <defaults>
</compile_context>

<pallas_src>
import functools

import jax
import jax.numpy as jnp
from jax.experimental import pallas as pl
from jax.experimental.pallas import tpu as pltpu

_LANES = 128


def _pick_tile_rows(s_rows, n_classes, itemsize):
    """Largest (multiple-of-8) row tile that fits a conservative VMEM budget."""
    budget = 12 * 1024 * 1024  # fits default scoped VMEM on v5e/v6e/v7x
    # per spatial row of 128 lanes:
    #   2x double-buffered input rows (C*128*itemsize) + label row (128*4B)
    #   ~5 live f32 full-tile temporaries in the body (score, exp, sel, products)
    per_row = 2 * (n_classes * _LANES * itemsize + _LANES * 4) \
        + 5 * n_classes * _LANES * 4
    cap = budget // per_row
    cap = max(8, (cap // 8) * 8)
    cap = min(cap, 1024)
    if s_rows <= cap:
        return s_rows          # single block covers full extent
    return cap                 # multiple of 8 -> valid sub-block


def _dice_stats_kernel(x_ref, t_ref, i_ref, y_ref, z_ref, *,
                       apply_softmax, has_pad):
    """Per-(batch, spatial-tile) partial Dice statistics.

    x_ref : (1, C, TR, 128) float   logits / probabilities
    t_ref : (1, 1, TR, 128) int32   class labels (-1 marks padding)
    i_ref / y_ref / z_ref : (1, 1, C, 128) float32 per-lane partial sums
    """
    score = x_ref[0].astype(jnp.float32)            # (C, TR, 128)
    tgt = t_ref[0, 0]                               # (TR, 128) int32

    if apply_softmax:
        m = jnp.max(score, axis=0, keepdims=True)
        e = jnp.exp(score - m)
        inv = pl.reciprocal(jnp.sum(e, axis=0, keepdims=True), approx=False)
        score = e * inv                             # EUP recip + VPU mul (no divide)

    if has_pad:
        # padded positions carry label -1 -> zero their probability mass
        score = jnp.where((tgt >= 0)[None, :, :], score, 0.0)

    class_ids = jax.lax.broadcasted_iota(jnp.int32, score.shape, 0)
    sel = tgt[None, :, :] == class_ids              # (C, TR, 128) bool, built once

    # sublane (row) reduce only; the cross-lane reduce is deferred to JAX.
    i_ref[0, 0] = jnp.sum(jnp.where(sel, score, 0.0), axis=1)       # intersect
    y_ref[0, 0] = jnp.sum(sel.astype(jnp.float32), axis=1)          # y_sum (0/1)
    z_ref[0, 0] = jnp.sum(score * score, axis=1)                    # z_sum


def ndice_loss_pallas(inputs, target, weight=None, softmax=False):
    """Equivalent of nDiceLoss(n_classes).forward(inputs, target, weight, softmax)."""
    B, C, H, W = inputs.shape
    HW = H * W

    x = inputs.reshape(B, C, HW)                    # keep caller dtype (bf16 ok)
    t = target.reshape(B, HW).astype(jnp.int32)

    lane_pad = (-HW) % _LANES
    s_rows = (HW + lane_pad) // _LANES
    tile_rows = _pick_tile_rows(s_rows, C, jnp.dtype(inputs.dtype).itemsize)
    row_pad = (-s_rows) % tile_rows
    s_rows_p = s_rows + row_pad
    total_pad = s_rows_p * _LANES - HW
    has_pad = total_pad > 0
    if has_pad:
        x = jnp.pad(x, ((0, 0), (0, 0), (0, total_pad)))
        t = jnp.pad(t, ((0, 0), (0, total_pad)), constant_values=-1)

    x = x.reshape(B, C, s_rows_p, _LANES)
    t = t.reshape(B, 1, s_rows_p, _LANES)
    n_tiles = s_rows_p // tile_rows

    kernel = functools.partial(_dice_stats_kernel,
                               apply_softmax=bool(softmax),
                               has_pad=bool(has_pad))

    stat_shape = jax.ShapeDtypeStruct((B, n_tiles, C, _LANES), jnp.float32)
    stat_spec = pl.BlockSpec((1, 1, C, _LANES), lambda b, s: (b, s, 0, 0))

    i_part, y_part, z_part = pl.pallas_call(
        kernel,
        out_shape=(stat_shape, stat_shape, stat_shape),
        grid_spec=pltpu.PrefetchScalarGridSpec(
            num_scalar_prefetch=0,
            grid=(B, n_tiles),
            in_specs=[
                pl.BlockSpec((1, C, tile_rows, _LANES), lambda b, s: (b, 0, s, 0)),
                pl.BlockSpec((1, 1, tile_rows, _LANES), lambda b, s: (b, 0, s, 0)),
            ],
            out_specs=(stat_spec, stat_spec, stat_spec),
        ),
        compiler_params=pltpu.CompilerParams(
            dimension_semantics=("parallel", "parallel")),
    )(x, t)

    # Tiny finalize in plain JAX (cross-lane + cross-block reduce, dice, weights).
    intersect = jnp.sum(i_part, axis=(0, 1, 3))     # (C,)
    y_sum = jnp.sum(y_part, axis=(0, 1, 3))
    z_sum = jnp.sum(z_part, axis=(0, 1, 3))

    if weight is None:
        weight = [1.0] * C
    w = jnp.asarray(weight, dtype=jnp.float32)
    smooth = 1e-05
    dice = 1.0 - (2.0 * intersect + smooth) / (z_sum + y_sum + smooth)
    return jnp.sum(dice * w) / C
    # TODO(synk): class_wise_dice uses .item() (host sync for logging only);
    # it is not part of the returned loss and is omitted.


def ndice_loss_ref(inputs, target, weight=None, softmax=False):
    """Pure-JAX reference matching the PyTorch module semantics."""
    C = inputs.shape[1]
    x = inputs.astype(jnp.float32)
    if softmax:
        x = jax.nn.softmax(x, axis=1)
    onehot = jax.nn.one_hot(target, C, axis=1, dtype=jnp.float32)
    if weight is None:
        weight = [1.0] * C
    smooth = 1e-05
    loss = 0.0
    for i in range(C):
        s = x[:, i]
        tt = onehot[:, i]
        intersect = jnp.sum(s * tt)
        y_sum = jnp.sum(tt * tt)
        z_sum = jnp.sum(s * s)
        dice = 1.0 - (2.0 * intersect + smooth) / (z_sum + y_sum + smooth)
        loss = loss + dice * weight[i]
    return loss / C


if __name__ == "__main__":
    key = jax.random.PRNGKey(0)
    k1, k2, k3, k4 = jax.random.split(key, 4)

    # lane-aligned case (HW multiple of 128)
    B, C, H, W = 2, 4, 16, 16
    inputs = jax.random.normal(k1, (B, C, H, W), dtype=jnp.float32)
    target = jax.random.randint(k2, (B, H, W), 0, C, dtype=jnp.int32)

    # non-aligned case exercising the padding/mask path
    H2, W2 = 15, 15
    inputs2 = jax.random.normal(k3, (B, C, H2, W2), dtype=jnp.float32)
    target2 = jax.random.randint(k4, (B, H2, W2), 0, C, dtype=jnp.int32)

    cases = [(inputs, target), (inputs2, target2)]
    weights = [None, [1.0, 2.0, 0.5, 1.5]]
    for xin, tin in cases:
        for sm in (True, False):
            for w in weights:
                got = jax.block_until_ready(
                    ndice_loss_pallas(xin, tin, weight=w, softmax=sm))
                want = jax.block_until_ready(
                    ndice_loss_ref(xin, tin, weight=w, softmax=sm))
                assert jnp.allclose(got, want, rtol=1e-5, atol=1e-5), \
                    (sm, w, got, want)

    print("KERNEL_OK")
</pallas_src>

<mosaic_0001>
module attributes {stable_mosaic.version = 11 : i64} {
  func.func @_dice_stats_kernel(%arg0: i32, %arg1: i32, %arg2: memref<1x4x2x128xf32, #tpu.memory_space<vmem>>, %arg3: memref<1x1x2x128xi32, #tpu.memory_space<vmem>>, %arg4: memref<1x1x4x128xf32, #tpu.memory_space<vmem>>, %arg5: memref<1x1x4x128xf32, #tpu.memory_space<vmem>>, %arg6: memref<1x1x4x128xf32, #tpu.memory_space<vmem>>) attributes {dimension_semantics = [#tpu.dimension_semantics<parallel>, #tpu.dimension_semantics<parallel>], iteration_bounds = array<i64: 2, 1>, scalar_prefetch = 0 : i64, scratch_operands = 0 : i64, tpu.core_type = #tpu.core_type<tc>, window_params = [{transform_indices = @transform_0, window_bounds = array<i64: 1, 4, 2, 128>}, {transform_indices = @transform_1, window_bounds = array<i64: 1, 1, 2, 128>}, {transform_indices = @transform_2, window_bounds = array<i64: 1, 1, 4, 128>}, {transform_indices = @transform_3, window_bounds = array<i64: 1, 1, 4, 128>}, {transform_indices = @transform_4, window_bounds = array<i64: 1, 1, 4, 128>}]} {
    %c0 = arith.constant 0 : index
    %c0_0 = arith.constant 0 : index
    %c0_1 = arith.constant 0 : index
    %c0_2 = arith.constant 0 : index
    %0 = vector.load %arg2[%c0, %c0_0, %c0_1, %c0_2] : memref<1x4x2x128xf32, #tpu.memory_space<vmem>>, vector<1x4x2x128xf32>
    %1 = vector.shape_cast %0 : vector<1x4x2x128xf32> to vector<4x2x128xf32>
    %c0_3 = arith.constant 0 : index
    %c0_4 = arith.constant 0 : index
    %c0_5 = arith.constant 0 : index
    %c0_6 = arith.constant 0 : index
    %2 = vector.load %arg3[%c0_3, %c0_4, %c0_5, %c0_6] : memref<1x1x2x128xi32, #tpu.memory_space<vmem>>, vector<1x1x2x128xi32>
    %3 = vector.shape_cast %2 : vector<1x1x2x128xi32> to vector<2x128xi32>
    %cst = arith.constant dense<0xFF800000> : vector<2x128xf32>
    %4 = vector.multi_reduction <maximumf>, %1, %cst [0] : vector<4x2x128xf32> to vector<2x128xf32>
    %5 = vector.shape_cast %4 : vector<2x128xf32> to vector<1x2x128xf32>
    %6 = vector.broadcast %5 : vector<1x2x128xf32> to vector<4x2x128xf32>
    %7 = arith.subf %1, %6 : vector<4x2x128xf32>
    %8 = math.exp %7 : vector<4x2x128xf32>
    %cst_7 = arith.constant dense<0.000000e+00> : vector<2x128xf32>
    %9 = vector.multi_reduction <add>, %8, %cst_7 [0] : vector<4x2x128xf32> to vector<2x128xf32>
    %10 = vector.shape_cast %9 : vector<2x128xf32> to vector<1x2x128xf32>
    %11 = tpu.reciprocal %10 : vector<1x2x128xf32> -> vector<1x2x128xf32>
    %12 = vector.broadcast %11 : vector<1x2x128xf32> to vector<4x2x128xf32>
    %13 = arith.mulf %8, %12 : vector<4x2x128xf32>
    %14 = tpu.iota {dimensions = array<i32: 0>} : vector<4x2x128xi32>
    %15 = vector.shape_cast %3 : vector<2x128xi32> to vector<1x2x128xi32>
    %16 = vector.broadcast %15 : vector<1x2x128xi32> to vector<4x2x128xi32>
    %17 = arith.cmpi eq, %16, %14 : vector<4x2x128xi32>
    %cst_8 = arith.constant 0.000000e+00 : f32
    %18 = vector.broadcast %cst_8 : f32 to vector<4x2x128xf32>
    %19 = arith.select %17, %13, %18 : vector<4x2x128xi1>, vector<4x2x128xf32>
    %cst_9 = arith.constant dense<0.000000e+00> : vector<4x128xf32>
    %20 = vector.multi_reduction <add>, %19, %cst_9 [1] : vector<4x2x128xf32> to vector<4x128xf32>
    %c0_10 = arith.constant 0 : index
    %c0_11 = arith.constant 0 : index
    %c0_12 = arith.constant 0 : index
    %c0_13 = arith.constant 0 : index
    %21 = vector.load %arg4[%c0_10, %c0_11, %c0_12, %c0_13] : memref<1x1x4x128xf32, #tpu.memory_space<vmem>>, vector<1x1x4x128xf32>
    %22 = vector.shape_cast %21 : vector<1x1x4x128xf32> to vector<4x128xf32>
    %23 = vector.shape_cast %20 : vector<4x128xf32> to vector<1x1x4x128xf32>
    tpu.vector_store %arg4[%c0_10, %c0_11, %c0_12, %c0_13], %23 {strides = array<i32>} : memref<1x1x4x128xf32, #tpu.memory_space<vmem>>, vector<1x1x4x128xf32>,
    %24 = arith.extui %17 : vector<4x2x128xi1> to vector<4x2x128xi32>
    %25 = arith.sitofp %24 : vector<4x2x128xi32> to vector<4x2x128xf32>
    %cst_14 = arith.constant dense<0.000000e+00> : vector<4x128xf32>
    %26 = vector.multi_reduction <add>, %25, %cst_14 [1] : vector<4x2x128xf32> to vector<4x128xf32>
    %c0_15 = arith.constant 0 : index
    %c0_16 = arith.constant 0 : index
    %c0_17 = arith.constant 0 : index
    %c0_18 = arith.constant 0 : index
    %27 = vector.load %arg5[%c0_15, %c0_16, %c0_17, %c0_18] : memref<1x1x4x128xf32, #tpu.memory_space<vmem>>, vector<1x1x4x128xf32>
    %28 = vector.shape_cast %27 : vector<1x1x4x128xf32> to vector<4x128xf32>
    %29 = vector.shape_cast %26 : vector<4x128xf32> to vector<1x1x4x128xf32>
    tpu.vector_store %arg5[%c0_15, %c0_16, %c0_17, %c0_18], %29 {strides = array<i32>} : memref<1x1x4x128xf32, #tpu.memory_space<vmem>>, vector<1x1x4x128xf32>,
    %30 = arith.mulf %13, %13 : vector<4x2x128xf32>
    %cst_19 = arith.constant dense<0.000000e+00> : vector<4x128xf32>
    %31 = vector.multi_reduction <add>, %30, %cst_19 [1] : vector<4x2x128xf32> to vector<4x128xf32>
    %c0_20 = arith.constant 0 : index
    %c0_21 = arith.constant 0 : index
    %c0_22 = arith.constant 0 : index
    %c0_23 = arith.constant 0 : index
    %32 = vector.load %arg6[%c0_20, %c0_21, %c0_22, %c0_23] : memref<1x1x4x128xf32, #tpu.memory_space<vmem>>, vector<1x1x4x128xf32>
    %33 = vector.shape_cast %32 : vector<1x1x4x128xf32> to vector<4x128xf32>
    %34 = vector.shape_cast %31 : vector<4x128xf32> to vector<1x1x4x128xf32>
    tpu.vector_store %arg6[%c0_20, %c0_21, %c0_22, %c0_23], %34 {strides = array<i32>} : memref<1x1x4x128xf32, #tpu.memory_space<vmem>>, vector<1x1x4x128xf32>,
    return
  }
  func.func @transform_0(%arg0: i32, %arg1: i32) -> (i32, i32, i32, i32) {
    %c0_i32 = arith.constant 0 : i32
    %c0_i32_0 = arith.constant 0 : i32
    %c0_i32_1 = arith.constant 0 : i32
    return %arg0, %c0_i32, %arg1, %c0_i32_0 : i32, i32, i32, i32
  }
  func.func @transform_1(%arg0: i32, %arg1: i32) -> (i32, i32, i32, i32) {
    %c0_i32 = arith.constant 0 : i32
    %c0_i32_0 = arith.constant 0 : i32
    %c0_i32_1 = arith.constant 0 : i32
    return %arg0, %c0_i32, %arg1, %c0_i32_0 : i32, i32, i32, i32
  }
  func.func @transform_2(%arg0: i32, %arg1: i32) -> (i32, i32, i32, i32) {
    %c0_i32 = arith.constant 0 : i32
    %c0_i32_0 = arith.constant 0 : i32
    %c0_i32_1 = arith.constant 0 : i32
    return %arg0, %arg1, %c0_i32, %c0_i32_0 : i32, i32, i32, i32
  }
  func.func @transform_3(%arg0: i32, %arg1: i32) -> (i32, i32, i32, i32) {
    %c0_i32 = arith.constant 0 : i32
    %c0_i32_0 = arith.constant 0 : i32
    %c0_i32_1 = arith.constant 0 : i32
    return %arg0, %arg1, %c0_i32, %c0_i32_0 : i32, i32, i32, i32
  }
  func.func @transform_4(%arg0: i32, %arg1: i32) -> (i32, i32, i32, i32) {
    %c0_i32 = arith.constant 0 : i32
    %c0_i32_0 = arith.constant 0 : i32
    %c0_i32_1 = arith.constant 0 : i32
    return %arg0, %arg1, %c0_i32, %c0_i32_0 : i32, i32, i32, i32
  }
}

</mosaic_0001>

<bundles_post_ra>
// kernel: tpu_custom_call.1
= control target key start
LH: loop header
LB: loop body
LE: loop exit
PB: predicated region body
PF: predicated region fallthrough
CT: control target
= control target key end

     0   :  { %s1320_s0 = inlined_call_operand.hbm [shape: f32[2,4,2,128], index: 0, kind: input, shape index: {}]   ;;  %s1321_s1 = inlined_call_operand.hbm [shape: s32[2,1,2,128], index: 1, kind: input, shape index: {}]   ;;  %s1322_s2 = inlined_call_operand.hbm [shape: f32[2,1,4,128], index: 2, kind: output, shape index: {0}]   ;;  %s1323_s3 = inlined_call_operand.hbm [shape: f32[2,1,4,128], index: 3, kind: output, shape index: {1}]   ;;  %s1324_s4 = inlined_call_operand.hbm [shape: f32[2,1,4,128], index: 4, kind: output, shape index: {2}]  }
   0x1   :  { %1327 = sst [smem:[#allocation16_spill]] %s1320_s0 }
   0x2   :  { %10 = vsyncpa [#allocation3], 0 }
   0x3   :  { %12 = vsyncpa [#allocation3 + $0x1], 0 }
   0x4   :  { %13 = vsyncpa [#allocation6], 0 }
   0x5   :  { %15 = vsyncpa [#allocation6 + $0x1], 0 }
   0x6   :  { %16 = vsyncpa [#allocation4], 0 }
   0x7   :  { %18 = vsyncpa [#allocation4 + $0x1], 0 }
   0x8   :  { %19 = vsyncpa [#allocation9], 0 }
   0x9   :  { %21 = vsyncpa [#allocation9 + $0x1], 0  ;;  %s1064_s15 = smov 0   ;;  %s1066_s16 = smov 0  }
   0xa   :  { %s1068_s17 = smov 0   ;;  %s1070_s18 = smov 0  }
   0xb   :  { %s1072_s19 = smov 0   ;;  %s1074_s20 = smov 0  }
   0xc LB: > { %s1095_s21 = sadd.s32 4294967295, %s1034_s20   ;;  %s1325_s22 = sadd.s32 4294967294, %s1034_s20   ;;  %s1034_s20 = sphi %s1074_s20, %s27_s20   ;;  %s1030_s19 = sphi %s1072_s19, %s1341_s19   ;;  %s1026_s18 = sphi %s1070_s18, %s1340_s18   ;;  %s1022_s17 = sphi %s1068_s17, %s1339_s17   ;;  %s1018_s16 = sphi %s1066_s16, %s1338_s16   ;;  %s1014_s15 = sphi %s1064_s15, %s1337_s15  }
   0xd   : > { %s39_s23 = sadd.s32 1, %s1030_s19  ;;  %s48_s24 = sadd.s32 1, %s1022_s17 }
   0xe   : > { %p41_p0 = scmp.ge.s32.totalorder %s39_s23, 2  ;;  %p55_p1 = scmp.ne.s32.totalorder %s1022_s17, %s1018_s16 }
   0xf   : > { %p56_p2 = scmp.eq.s32.totalorder %s1034_s20, 0  ;;  %p61_p3 = scmp.ne.s32.totalorder %s1018_s16, %s1014_s15 }
  0x10   : > { %s1343_s23 = smov (%p41_p0, %s39_s23), 0  ;;  %p62_p5 = scmp.eq.s32.totalorder %s1095_s21, 0 }
  0x11   : > { %1328 = sst [smem:[#allocation15_spill]] %s1343_s23  ;;  %p1107_p4 = por %p56_p2, %p55_p1 }
  0x12   : > { %s43_s26 = ssub.s32 %s1030_s19, %s1343_s23  ;;  %p115_p6 = scmp.eq.s32.totalorder %s1095_s21, 1 }
  0x13   : > { %p46_p7 = scmp.eq.s32.totalorder %s43_s26, 0  ;;  %p1115_p8 = por %p62_p5, %p61_p3 }
  0x14   : > { %p1119_p9 = por %p115_p6, %p55_p1  ;;  %p121_p10 = scmp.eq.s32.totalorder %s1325_s22, 1 }
  0x15   : > { %s1126_s29 = scalar_select %p46_p7, %s1022_s17, %s48_s24  }
  0x16   : > { %p1128_p11 = por %p121_p10, %p61_p3  ;;  %p713_p12 = scmp.ge.s32.totalorder %s1034_s20, 2 }
  0x17   : > { %p765_p13 = scmp.lt.s32.totalorder %s1034_s20, 2  ;;  %s197_s5 = sand.u32 1, %s1022_s17  }
  0x18   : > { %s714_s6 = sshll.u32 %s197_s5, 3  ;;  %s737_s7 = sshll.u32 %s1030_s19, 3 }
  0x19   : > { %s1333_s0 = sld [smem:[#allocation16_spill]]  ;;  %s201_s11 = scalar_lea.vmem [#allocation2], %s714_s6 }
  0x1a   : > { %s210_s12 = sshll.u32 %s201_s11, 4  ;;  %p1141_p0 = pnand %p765_p13, %p1107_p4  ;;  %s211_s12 = int_to_ptr.vmem [resolvable:$true] %s210_s12 }
  0x1b   : > { %p719_p1 = scmp.ge.s32.totalorder %s1034_s20, 1  ;;  %s198_s24 = scalar_lea.sflag [#allocation3], %s197_s5 }
  0x1c   : > { %s1036_s26 = smov 32   ;;  %s1037_s22 = smov 2  }
  0x1d   : > { %p238_p2 = scmp.lt.s32.totalorder %s1034_s20, 3  ;;  %s718_s6 = sshll.u32 %s1030_s19, 1 }
  0x1e   : > { %s229_s25 = scalar_lea.hbm %s1321_s1, %s718_s6  ;;  %s221_s23 = scalar_lea.sflag [#allocation6], %s197_s5 }
  0x1f   : > { %s207_s10 = scalar_lea.hbm %s1333_s0, %s737_s7  ;;  %s717_s7 = sshll.u32 %s197_s5, 1 }
  0x20   : > { %s208_s13 = sshll.u32 %s207_s10, 4  ;;  %p239_p3 = pnand %p719_p1, %p238_p2  ;;  %s209_s13 = int_to_ptr.hbm [resolvable:$true] %s208_s13 }
  0x21   : > { %751 = dma.hbm_to_vmem [thread:$0]  (!%p1141_p0), %s209_s13, 128, %s211_s12, %s198_s24, %s1036_s26, %s1036_s26, %s1037_s22  }
  0x22   : > { %s224_s10 = scalar_lea.vmem [#allocation5], %s717_s7  ;;  %s231_s0 = sshll.u32 %s229_s25, 4  ;;  %s232_s0 = int_to_ptr.hbm [resolvable:$true] %s231_s0 }
  0x23   : > { %s233_s11 = sshll.u32 %s224_s10, 4  ;;  %242 = sbr.rel (%p239_p3) target bundleno = 127 (0x7f), region = 28  ;;  %s234_s11 = int_to_ptr.vmem [resolvable:$true] %s233_s11 }
  0x24   : > { %754 = dma.hbm_to_vmem [thread:$0]  (!%p1141_p0), %s232_s0, 32, %s234_s11, %s221_s23  }
  0x25   : > { %s1156_s22 = sand.u32 (!%p239_p3), 1, %s1018_s16  }
  0x26   : > { %s720_s12 = sshll.u32 (!%p239_p3), %s1156_s22, 3  ;;  %s245_s13 = scalar_lea.sflag (!%p239_p3), [#allocation3], %s1156_s22 }
  0x27   : > { %s248_s24 = scalar_lea.vmem (!%p239_p3), [#allocation2], %s720_s12 }
  0x28   : > { %997 = dma.done.wait (%p1115_p8), %s245_s13, 128  }
  0x29   : > { %999 = vsyncadd (%p1115_p8), %s245_s13, 4294967168  ;;  %s721_s5 = sshll.u32 %s1156_s22, 1  ;;  %s255_s0 = scalar_lea.sflag [#allocation6], %s1156_s22 }
  0x2a   : > { %s258_s23 = scalar_lea.vmem [#allocation5], %s721_s5 }
  0x2b   : > { %1001 = dma.done.wait (%p1115_p8), %s255_s0, 32  }
  0x2c   : > { %1003 = vsyncadd (%p1115_p8), %s255_s0, 4294967264  ;;  %vm304_vm0 = vcmask 1041408   ;;  %v1170_v0 = vld [vmem:[%s258_s23] sm:$0x3]  ;;  %v299_v1 = vld [vmem:[%s248_s24] sm:$0x3] }
  0x2d   : > { %v300_v2 = vld [vmem:[%s248_s24 + $0x2] sm:$0x3]  ;;  %vm349_vm1 = vcmp.eq.s32.totalorder %v1170_v0, 0  ;;  %vm350_vm2 = vcmp.eq.s32.totalorder %v1170_v0, 1  ;;  %vm351_vm3 = vcmp.eq.s32.totalorder %v1170_v0, 2  ;;  %vm352_vm4 = vcmp.eq.s32.totalorder %v1170_v0, 3 }
  0x2e   : > { %v301_v3 = vld [vmem:[%s248_s24 + $0x4] sm:$0x3]  ;;  %v1038_v4 = vmov 0.0   ;;  %v302_v9 = vld [vmem:[%s248_s24 + $0x6] sm:$0x3]  ;;  %v305_v18 = vsel %vm304_vm0, %v299_v1, -inf }
  0x2f   : > { %v725_v5 = vsel %vm349_vm1, 1.0, %v1038_v4  ;;  %v726_v6 = vsel %vm350_vm2, 1.0, %v1038_v4  ;;  %v727_v7 = vsel %vm351_vm3, 1.0, %v1038_v4  ;;  %v728_v8 = vsel %vm352_vm4, 1.0, %v1038_v4  ;;  %s1193_s27 = sshll.u32 %s1156_s22, 2  ;;  %s1196_s14 = sshll.u32 %s1026_s18, 2 }
  0x30   : > { %v405_v10 = vsel %vm304_vm0, %v725_v5, 0.0  ;;  %v412_v11 = vsel %vm304_vm0, %v726_v6, 0.0  ;;  %v419_v12 = vsel %vm304_vm0, %v727_v7, 0.0  ;;  %v426_v13 = vsel %vm304_vm0, %v728_v8, 0.0  ;;  %s520_s6 = scalar_lea.hbm %s1323_s3, %s1196_s14  ;;  %s291_s18 = scalar_lea.vmem [#allocation8], %s1193_s27 }
  0x31   : > { %v406_v14 = vrot.slane %v405_v10, 4  ;;  %v413_v15 = vrot.slane %v412_v11, 4  ;;  %v420_v16 = vrot.slane %v419_v12, 4  ;;  %v427_v17 = vrot.slane %v426_v13, 4  ;;  %s1203_s8 = sshll.u32 %s291_s18, 4  ;;  %s488_s9 = sand.u32 1, %s1095_s21   ;;  %s523_s8 = int_to_ptr.vmem [resolvable:$true] %s1203_s8 }
  0x32   : > { %v306_v19 = vsel %vm304_vm0, %v300_v2, -inf  ;;  %v307_v20 = vsel %vm304_vm0, %v301_v3, -inf  ;;  %v308_v21 = vsel %vm304_vm0, %v302_v9, -inf  ;;  %vm389_vm5 = vcmask 1041409   ;;  %s524_s25 = sshll.u32 %s520_s6, 4  ;;  %s1210_s10 = scalar_lea.sflag [#allocation9], %s488_s9  ;;  %s525_s25 = int_to_ptr.hbm [resolvable:$true] %s524_s25 }
  0x33   : > { %v407_v22 = vadd.f32 %v406_v14, %v405_v10  ;;  %v414_v23 = vadd.f32 %v413_v15, %v412_v11  ;;  %v421_v24 = vadd.f32 %v420_v16, %v419_v12  ;;  %v428_v25 = vadd.f32 %v427_v17, %v426_v13  ;;  %s902_s21 = sshra.s32 %s525_s25, 4  ;;  %s908_s24 = scalar_lea.hbm %s1323_s3, 8  ;;  %s903_s21 = int_to_ptr.hbm [resolvable:$true] %s902_s21 }
  0x34   : > { %v309_v26 = vmax.f32 %v305_v18, %v306_v19  ;;  %v310_v27 = vmax.f32 %v307_v20, %v308_v21  ;;  %vm391_vm6 = vcmask 1042434   ;;  %vm393_vm7 = vcmask 1043459   ;;  %s904_s11 = scalar_lea.hbm %s903_s21, 4  ;;  %p909_p7 = scmp.lt.s32.totalorder %s903_s21, %s1323_s3 }
  0x35   : > { %v408_v28 = vrot.slane %v407_v22, 2  ;;  %v415_v29 = vrot.slane %v414_v23, 2  ;;  %v422_v30 = vrot.slane %v421_v24, 2  ;;  %v429_v31 = vrot.slane %v428_v25, 2  ;;  %p905_p4 = scmp.ne.s32.totalorder %s903_s21, %s904_s11  ;;  %p910_p8 = scmp.lt.s32.totalorder %s908_s24, %s904_s11 }
  0x36   : > { %v311_v32 = vmax.f32 %v309_v26, %v310_v27 }
  0x37   : > { %v409_v33 = vadd.f32 %v408_v28, %v407_v22  ;;  %v416_v34 = vadd.f32 %v415_v29, %v414_v23  ;;  %v423_v35 = vadd.f32 %v422_v30, %v421_v24  ;;  %v430_v36 = vadd.f32 %v429_v31, %v428_v25  ;;  %p906_p5 = pnand %p905_p4, %p1119_p9  ;;  %p911_p10 = por %p910_p8, %p909_p7 }
  0x38   : > { %v312_v37 = vsub.f32 %v299_v1, %v311_v32  ;;  %v313_v38 = vsub.f32 %v300_v2, %v311_v32  ;;  %v314_v39 = vsub.f32 %v301_v3, %v311_v32  ;;  %v315_v40 = vsub.f32 %v302_v9, %v311_v32 }
  0x39   : > { %v410_v41 = vrot.slane %v409_v33, 1  ;;  %v417_v42 = vrot.slane %v416_v34, 1  ;;  %v424_v43 = vrot.slane %v423_v35, 1  ;;  %v431_v44 = vrot.slane %v430_v36, 1  ;;  %p907_p6 = pneg %p906_p5 }
  0x3a   : > { %v316_v45 = vmul.f32 1.442695, %v312_v37  ;;  %v318_v46 = vmul.f32 1.442695, %v313_v38  ;;  %v320_v47 = vmul.f32 1.442695, %v314_v39 }
  0x3b   : > { %v411_v48 = vadd.f32 %v410_v41, %v409_v33  ;;  %v418_v49 = vadd.f32 %v417_v42, %v416_v34  ;;  %v425_v50 = vadd.f32 %v424_v43, %v423_v35  ;;  %v432_v51 = vadd.f32 %v431_v44, %v430_v36  ;;  %p912_p13 = pnand %p911_p10, %p907_p6 }
  0x3c   : > { %818 = vpow2.f32 %v316_v45  ;;  %v322_v52 = vmul.f32 1.442695, %v315_v40 }
  0x3d   : > { %v437_v53 = vsel %vm389_vm5, %v418_v49, %v411_v48  ;;  %820 = vpow2.f32 %v318_v46 }
  0x3e   : > { %v438_v54 = vsel %vm391_vm6, %v425_v50, %v437_v53  ;;  %822 = vpow2.f32 %v320_v47 }
  0x3f   : > { %v439_v55 = vsel %vm393_vm7, %v432_v51, %v438_v54  ;;  %824 = vpow2.f32 %v322_v52 }
  0x40   : > { %441 = vst [vmem:[%s291_s18] sm:$0xf] %v439_v55 }
  0x41   : > { %915 = shalt.err (!%p912_p13)
}
  0x42   : > { %743 = dma.vmem_to_hbm [thread:$0]  (%p1119_p9), %s523_s8, 64, %s525_s25, %s1210_s10   ;;  %v819_v56 = vpop.eup %818 }
  0x43   : > { %v821_v57 = vpop.eup %820  ;;  %v324_v58 = vsel %vm304_vm0, %v819_v56, 0.0  ;;  %s505_s7 = scalar_lea.hbm %s1322_s2, %s1196_s14  ;;  %s284_s6 = scalar_lea.vmem [#allocation7], %s1193_s27 }
  0x44   : > { %v823_v59 = vpop.eup %822  ;;  %v325_v60 = vsel %vm304_vm0, %v821_v57, 0.0  ;;  %s1248_s18 = sshll.u32 %s284_s6, 4  ;;  %s1250_s8 = sshll.u32 %s505_s7, 4  ;;  %s508_s18 = int_to_ptr.vmem [resolvable:$true] %s1248_s18  ;;  %s510_s8 = int_to_ptr.hbm [resolvable:$true] %s1250_s8 }
  0x45   : > { %v825_v61 = vpop.eup %824  ;;  %v326_v62 = vadd.f32 %v325_v60, %v324_v58  ;;  %v327_v63 = vsel %vm304_vm0, %v823_v59, 0.0  ;;  %s535_s21 = scalar_lea.hbm %s1324_s4, %s1196_s14  ;;  %s298_s11 = scalar_lea.vmem [#allocation10], %s1193_s27 }
  0x46   : > { %v329_v1 = vsel %vm304_vm0, %v825_v61, 0.0  ;;  %s1262_s12 = sshll.u32 %s298_s11, 4  ;;  %s1264_s13 = sshll.u32 %s535_s21, 4  ;;  %s538_s12 = int_to_ptr.vmem [resolvable:$true] %s1262_s12  ;;  %s540_s13 = int_to_ptr.hbm [resolvable:$true] %s1264_s13 }
  0x47   : > { %v328_v2 = vadd.f32 %v327_v63, %v326_v62  ;;  %s484_s14 = scalar_lea.sflag [#allocation4], %s1156_s22  ;;  %s930_s24 = sshra.s32 %s510_s8, 4  ;;  %s931_s24 = int_to_ptr.hbm [resolvable:$true] %s930_s24 }
  0x48   : > { %s932_s5 = scalar_lea.hbm %s931_s24, 4  ;;  %s936_s26 = scalar_lea.hbm %s1322_s2, 8 }
  0x49   : > { %v330_v3 = vadd.f32 %v329_v1, %v328_v2  ;;  %p933_p0 = scmp.ne.s32.totalorder %s931_s24, %s932_s5  ;;  %p937_p3 = scmp.lt.s32.totalorder %s931_s24, %s1322_s2 }
  0x4a   : > { %p938_p4 = scmp.lt.s32.totalorder %s936_s26, %s932_s5 }
  0x4b   : > { %826 = vrcp.f32 %v330_v3  ;;  %v342_v6 = vand.u32 2147483648, %v330_v3  ;;  %vm336_vm8 = vweird.f32 %v330_v3  ;;  %v340_v8 = vand.u32 2147483647, %v330_v3  ;;  %p934_p1 = pnand %p933_p0, %p1119_p9 }
  0x4c   : > { %p939_p5 = por %p938_p4, %p937_p3 }
  0x4d   : > { %v343_v10 = vor.u32 1.1754944e-38, %v342_v6  ;;  %vm341_vm11 = vcmp.eq.f32.partialorder %v340_v8, 8.507059e+37  ;;  %p935_p2 = pneg %p934_p1 }
  0x4f   : > { %p940_p6 = pnand %p939_p5, %p935_p2 }
  0x51   : > { %v827_v4 = vpop.eup %826 }
  0x52   : > { %v332_v5 = vmul.f32 %v827_v4, %v330_v3  ;;  %vm337_vm9 = vweird.f32 %v827_v4 }
  0x53   : > { %vm338_vm10 = vmor %vm336_vm8, %vm337_vm9 }
  0x54   : > { %v333_v7 = vsub.f32 1.0, %v332_v5 }
  0x56   : > { %v334_v9 = vmul.f32 %v827_v4, %v333_v7 }
  0x58   : > { %v335_v11 = vadd.f32 %v827_v4, %v334_v9 }
  0x5a   : > { %v339_v12 = vsel %vm338_vm10, %v827_v4, %v335_v11 }
  0x5b   : > { %v344_v13 = vsel %vm341_vm11, %v343_v10, %v339_v12 }
  0x5c   : > { %v345_v14 = vmul.f32 %v819_v56, %v344_v13  ;;  %v346_v15 = vmul.f32 %v821_v57, %v344_v13  ;;  %v347_v16 = vmul.f32 %v823_v59, %v344_v13  ;;  %v348_v17 = vmul.f32 %v825_v61, %v344_v13 }
  0x5e   : > { %v353_v18 = vsel %vm349_vm1, %v345_v14, 0.0  ;;  %v354_v19 = vsel %vm350_vm2, %v346_v15, 0.0  ;;  %v355_v20 = vsel %vm351_vm3, %v347_v16, 0.0  ;;  %v356_v21 = vsel %vm352_vm4, %v348_v17, 0.0 }
  0x5f   : > { %v357_v22 = vsel %vm304_vm0, %v353_v18, 0.0  ;;  %v364_v23 = vsel %vm304_vm0, %v354_v19, 0.0  ;;  %v371_v24 = vsel %vm304_vm0, %v355_v20, 0.0  ;;  %v378_v25 = vsel %vm304_vm0, %v356_v21, 0.0 }
  0x60   : > { %v358_v26 = vrot.slane %v357_v22, 4  ;;  %v365_v27 = vrot.slane %v364_v23, 4  ;;  %v372_v28 = vrot.slane %v371_v24, 4  ;;  %v379_v29 = vrot.slane %v378_v25, 4 }
  0x61   : > { %v442_v30 = vmul.f32 %v345_v14, %v345_v14  ;;  %v443_v31 = vmul.f32 %v346_v15, %v346_v15  ;;  %v444_v32 = vmul.f32 %v347_v16, %v347_v16  ;;  %v445_v33 = vmul.f32 %v348_v17, %v348_v17 }
  0x62   : > { %v359_v34 = vadd.f32 %v358_v26, %v357_v22  ;;  %v366_v35 = vadd.f32 %v365_v27, %v364_v23  ;;  %v373_v0 = vadd.f32 %v372_v28, %v371_v24  ;;  %v380_v36 = vadd.f32 %v379_v29, %v378_v25 }
  0x63   : > { %v446_v37 = vsel %vm304_vm0, %v442_v30, 0.0  ;;  %v453_v38 = vsel %vm304_vm0, %v443_v31, 0.0  ;;  %v460_v39 = vsel %vm304_vm0, %v444_v32, 0.0  ;;  %v467_v40 = vsel %vm304_vm0, %v445_v33, 0.0 }
  0x64   : > { %v360_v41 = vrot.slane %v359_v34, 2  ;;  %v367_v42 = vrot.slane %v366_v35, 2  ;;  %v374_v43 = vrot.slane %v373_v0, 2  ;;  %v381_v44 = vrot.slane %v380_v36, 2 }
  0x65   : > { %v447_v45 = vrot.slane %v446_v37, 4  ;;  %v454_v46 = vrot.slane %v453_v38, 4  ;;  %v461_v47 = vrot.slane %v460_v39, 4  ;;  %v468_v48 = vrot.slane %v467_v40, 4 }
  0x66   : > { %v361_v49 = vadd.f32 %v360_v41, %v359_v34  ;;  %v368_v50 = vadd.f32 %v367_v42, %v366_v35  ;;  %v375_v51 = vadd.f32 %v374_v43, %v373_v0  ;;  %v382_v52 = vadd.f32 %v381_v44, %v380_v36 }
  0x67   : > { %v448_v53 = vadd.f32 %v447_v45, %v446_v37  ;;  %v455_v54 = vadd.f32 %v454_v46, %v453_v38  ;;  %v462_v55 = vadd.f32 %v461_v47, %v460_v39  ;;  %v469_v56 = vadd.f32 %v468_v48, %v467_v40 }
  0x68   : > { %v362_v57 = vrot.slane %v361_v49, 1  ;;  %v369_v58 = vrot.slane %v368_v50, 1  ;;  %v376_v59 = vrot.slane %v375_v51, 1  ;;  %v383_v60 = vrot.slane %v382_v52, 1 }
  0x69   : > { %v449_v61 = vrot.slane %v448_v53, 2  ;;  %v456_v62 = vrot.slane %v455_v54, 2  ;;  %v463_v63 = vrot.slane %v462_v55, 2  ;;  %v470_v1 = vrot.slane %v469_v56, 2 }
  0x6a   : > { %v363_v2 = vadd.f32 %v362_v57, %v361_v49  ;;  %v370_v3 = vadd.f32 %v369_v58, %v368_v50  ;;  %v377_v4 = vadd.f32 %v376_v59, %v375_v51  ;;  %v384_v5 = vadd.f32 %v383_v60, %v382_v52 }
  0x6b   : > { %v450_v6 = vadd.f32 %v449_v61, %v448_v53  ;;  %v457_v7 = vadd.f32 %v456_v62, %v455_v54  ;;  %v464_v8 = vadd.f32 %v463_v63, %v462_v55  ;;  %v471_v9 = vadd.f32 %v470_v1, %v469_v56 }
  0x6c   : > { %v390_v10 = vsel %vm389_vm5, %v370_v3, %v363_v2 }
  0x6d   : > { %v392_v11 = vsel %vm391_vm6, %v377_v4, %v390_v10  ;;  %v451_v12 = vrot.slane %v450_v6, 1  ;;  %v458_v13 = vrot.slane %v457_v7, 1  ;;  %v465_v14 = vrot.slane %v464_v8, 1 }
  0x6e   : > { %v394_v15 = vsel %vm393_vm7, %v384_v5, %v392_v11  ;;  %v472_v16 = vrot.slane %v471_v9, 1 }
  0x6f   : > { %396 = vst [vmem:[%s284_s6] sm:$0xf] %v394_v15  ;;  %v452_v17 = vadd.f32 %v451_v12, %v450_v6  ;;  %v459_v18 = vadd.f32 %v458_v13, %v457_v7  ;;  %v466_v19 = vadd.f32 %v465_v14, %v464_v8 }
  0x70   : > { %v473_v20 = vadd.f32 %v472_v16, %v471_v9 }
  0x71   : > { %943 = shalt.err (!%p940_p6)
}
  0x72   : > { %742 = dma.vmem_to_hbm [thread:$0]  (%p1119_p9), %s508_s18, 64, %s510_s8, %s484_s14   ;;  %v478_v21 = vsel %vm389_vm5, %v459_v18, %v452_v17 }
  0x73   : > { %v479_v22 = vsel %vm391_vm6, %v466_v19, %v478_v21  ;;  %s958_s22 = sshra.s32 %s540_s13, 4  ;;  %s964_s18 = scalar_lea.hbm %s1324_s4, 8  ;;  %s959_s22 = int_to_ptr.hbm [resolvable:$true] %s958_s22 }
  0x74   : > { %v480_v23 = vsel %vm393_vm7, %v473_v20, %v479_v22  ;;  %s960_s27 = scalar_lea.hbm %s959_s22, 4  ;;  %p965_p13 = scmp.lt.s32.totalorder %s959_s22, %s1324_s4 }
  0x75   : > { %482 = vst [vmem:[%s298_s11] sm:$0xf] %v480_v23  ;;  %p961_p7 = scmp.ne.s32.totalorder %s959_s22, %s960_s27  ;;  %p966_p0 = scmp.lt.s32.totalorder %s964_s18, %s960_s27 }
  0x77   : > { %p962_p8 = pnand %p961_p7, %p1119_p9  ;;  %p967_p1 = por %p966_p0, %p965_p13 }
  0x79   : > { %p963_p10 = pneg %p962_p8 }
  0x7b   : > { %p968_p2 = pnand %p967_p1, %p963_p10 }
  0x7d   : > { %971 = shalt.err (!%p968_p2)
}
  0x7e   : > { %744 = dma.vmem_to_hbm [thread:$0]  (%p1119_p9), %s538_s12, 64, %s540_s13, %s1210_s10  }
  0x7f PF: > { %s551_s11 = sand.u32 1, %s1014_s15   ;;  %p756_p3 = pnand %p713_p12, %p1128_p11 }
  0x80   : > { %s552_s14 = scalar_lea.sflag [#allocation4], %s551_s11 }
  0x81   : > { %p757_p4 = pneg %p756_p3 }
  0x83   : > { %1005 = dma.done.wait (%p757_p4), %s552_s14, 64  }
  0x84   : > { %1007 = vsyncadd (%p757_p4), %s552_s14, 4294967232  ;;  %s1335_s24 = sadd.s32 4294967294, %s1034_s20  }
  0x85   : > { %s561_s5 = sand.u32 1, %s1335_s24  }
  0x86   : > { %s562_s0 = scalar_lea.sflag [#allocation9], %s561_s5 }
  0x87   : > { %1009 = dma.done.wait (%p757_p4), %s562_s0, 128  }
  0x88   : > { %1011 = vsyncadd (%p757_p4), %s562_s0, 4294967168  ;;  %s27_s20 = sadd.s32 1, %s1034_s20   ;;  %s1336_s28 = sld [smem:[#allocation15_spill]] }
  0x89   : > { %p24_p9 = scmp.ge.s32.totalorder %s27_s20, 4   ;;  %s1337_s15 = smov %s1018_s16 }
  0x8a   : > { %s1338_s16 = smov %s1022_s17  ;;  %s1339_s17 = smov %s1126_s29 }
  0x8b   : > { %s1340_s18 = smov %s1030_s19  ;;  %26 = sbr.rel (!%p24_p9) target bundleno = 12 (0xc), region = 118 }
  0x8e   : > { %s1341_s19 = smov %s1336_s28 }
  0x90   :  { %578 = vsyncpa [#allocation3], 1 }
  0x91   :  { %580 = vsyncpa [#allocation3 + $0x1], 1 }
  0x92   :  { %581 = vsyncpa [#allocation6], 1 }
  0x93   :  { %583 = vsyncpa [#allocation6 + $0x1], 1 }
  0x94   :  { %584 = vsyncpa [#allocation4], 1 }
  0x95   :  { %586 = vsyncpa [#allocation4 + $0x1], 1 }
  0x96   :  { %587 = vsyncpa [#allocation9], 1 }
  0x97   :  { %589 = vsyncpa [#allocation9 + $0x1], 1 }

</bundles_post_ra>
